<compile_context>
chip_gen: v5e
topology: v5e:2x2
jax: 0.10.0
libtpu: 0.0.40
codegen_flags: <defaults>
</compile_context>

<pallas_src>
import jax
import jax.numpy as jnp
from jax.experimental import pallas as pl
from jax.experimental.pallas import tpu as pltpu


def mlp_kernel(x_ref, w1_ref, b1_ref, w2_ref, b2_ref, w3_ref, b3_ref, o_ref):
    x = x_ref[...]            # (tb, n_in)  f32
    w1 = w1_ref[...]          # (n_in, 128) f32

    # ---- Layer 1 on the VPU: K is tiny, so skip the MXU entirely. ----
    n_in = x.shape[1]
    h1 = x[:, 0:1] * w1[0:1, :]
    for k in range(1, n_in):                      # static python loop (n_in small)
        h1 = h1 + x[:, k:k + 1] * w1[k:k + 1, :]
    h1 = jnp.maximum(h1 + b1_ref[...], 0.0)       # (tb, 128) f32

    # ---- Layer 2: MXU, bf16 operands, f32 accumulation. ----
    h2 = jnp.dot(h1.astype(jnp.bfloat16), w2_ref[...],
                 preferred_element_type=jnp.float32)
    h2 = jnp.maximum(h2 + b2_ref[...], 0.0)       # (tb, 64) f32

    # ---- Layer 3: MXU, bf16 operands, f32 accumulation. ----
    out = jnp.dot(h2.astype(jnp.bfloat16), w3_ref[...],
                  preferred_element_type=jnp.float32)
    o_ref[...] = (out + b3_ref[...]).astype(o_ref.dtype)


def _round_up(v, m):
    return ((v + m - 1) // m) * m


def neural_network_forward(x, params, *, tile_b=4096):
    """x: (B, n_input) f32. params: dict of (in,out) weights and (1,out) biases."""
    w1, b1, w2, b2, w3, b3 = (params["w1"], params["b1"], params["w2"],
                              params["b2"], params["w3"], params["b3"])
    B, n_in = x.shape
    n_out = w3.shape[1]

    # Resident MXU weights as bf16 (single-pass matmul); layer-1 weight stays
    # f32 since it is consumed by the VPU path.  Biases stay f32.
    w2_bf16 = w2.astype(jnp.bfloat16)
    w3_bf16 = w3.astype(jnp.bfloat16)

    # Batch tile selection:
    #  - clamp to B for small batches (block == full dim is exempt from (8,128))
    #  - ensure >= 2 grid steps when possible so v7x's 2 TensorCores both work
    #  - keep tiled blocks a multiple of 16 (bf16-friendly sublane packing)
    tb = min(tile_b, B)
    if B > 16:
        tb = min(tb, _round_up(pl.cdiv(B, 2), 16))
    if tb < B:
        tb = max(16, (tb // 16) * 16)
    grid = (pl.cdiv(B, tb),)

    # Weights / biases stay resident across all grid steps (constant index_map).
    def resident(shape):
        return pl.BlockSpec(shape, lambda i: tuple(0 for _ in shape))

    n_param_bytes = 4 * (n_in * 128 + 128 + 128 * 64 + 64 + 64 * n_out + n_out)
    cost = pl.CostEstimate(
        flops=2 * B * (n_in * 128 + 128 * 64 + 64 * n_out),
        bytes_accessed=4 * B * (n_in + n_out) + n_param_bytes,
        transcendentals=0,
    )

    # Default scoped VMEM covers tb <= 4096 everywhere (~12 MiB footprint);
    # only raise the limit if a caller pushes the tile beyond that.
    vmem_limit = 48 * 1024 * 1024 if tb > 4096 else None

    return pl.pallas_call(
        mlp_kernel,
        out_shape=jax.ShapeDtypeStruct((B, n_out), jnp.float32),
        grid=grid,
        in_specs=[
            pl.BlockSpec((tb, n_in), lambda i: (i, 0)),   # streamed x tile
            resident(w1.shape), resident(b1.shape),
            resident(w2_bf16.shape), resident(b2.shape),
            resident(w3_bf16.shape), resident(b3.shape),
        ],
        out_specs=pl.BlockSpec((tb, n_out), lambda i: (i, 0)),
        compiler_params=pltpu.CompilerParams(
            dimension_semantics=("parallel",),
            vmem_limit_bytes=vmem_limit),
        cost_estimate=cost,
    )(x, w1, b1, w2_bf16, b2, w3_bf16, b3)


def init_params(key, n_input, n_output):
    """Deterministic PyTorch-style (Kaiming-uniform-ish) init; weights stored (in, out)."""
    def linear(key, fan_in, fan_out):
        kw, kb = jax.random.split(key)
        bound = 1.0 / (fan_in ** 0.5)
        w = jax.random.uniform(kw, (fan_in, fan_out), jnp.float32, -bound, bound)
        b = jax.random.uniform(kb, (1, fan_out), jnp.float32, -bound, bound)
        return w, b

    k1, k2, k3 = jax.random.split(key, 3)
    w1, b1 = linear(k1, n_input, 128)
    w2, b2 = linear(k2, 128, 64)
    w3, b3 = linear(k3, 64, n_output)
    return {"w1": w1, "b1": b1, "w2": w2, "b2": b2, "w3": w3, "b3": b3}


def _reference(x, params):
    h = jnp.maximum(x @ params["w1"] + params["b1"], 0.0)
    h = jnp.maximum(h @ params["w2"] + params["b2"], 0.0)
    return h @ params["w3"] + params["b3"]


if __name__ == "__main__":
    n_input, n_output = 4, 3   # Iris: 4 features, 3 classes

    key = jax.random.PRNGKey(0)
    kx, kp, kx2 = jax.random.split(key, 3)
    params = init_params(kp, n_input, n_output)

    # bf16 MXU operands (f32 accumulation) -> loosen tolerance vs f32 reference.
    ATOL = RTOL = 2e-2

    # Case 1: small batch (single grid step, block == full batch).
    x_small = jax.random.normal(kx, (8, n_input), jnp.float32)
    out_small = jax.block_until_ready(neural_network_forward(x_small, params))
    ref_small = _reference(x_small, params)
    assert out_small.shape == (8, n_output)
    assert jnp.allclose(out_small, ref_small, atol=ATOL, rtol=RTOL)

    # Case 2: multi-step batch grid with a partial last tile (48 rows, tile 16
    # -> 3 grid steps); exercises the streaming / resident-weight path and the
    # >=2-step split for v7x megacore sharding.
    x_big = jax.random.normal(kx2, (48, n_input), jnp.float32)
    out_big = jax.block_until_ready(
        neural_network_forward(x_big, params, tile_b=16))
    ref_big = _reference(x_big, params)
    assert out_big.shape == (48, n_output)
    assert jnp.allclose(out_big, ref_big, atol=ATOL, rtol=RTOL)

    print("KERNEL_OK")
</pallas_src>

<mosaic_0001>
module attributes {stable_mosaic.version = 11 : i64} {
  func.func @mlp_kernel(%arg0: i32, %arg1: memref<8x4xf32, #tpu.memory_space<vmem>>, %arg2: memref<4x128xf32, #tpu.memory_space<vmem>>, %arg3: memref<1x128xf32, #tpu.memory_space<vmem>>, %arg4: memref<128x64xbf16, #tpu.memory_space<vmem>>, %arg5: memref<1x64xf32, #tpu.memory_space<vmem>>, %arg6: memref<64x3xbf16, #tpu.memory_space<vmem>>, %arg7: memref<1x3xf32, #tpu.memory_space<vmem>>, %arg8: memref<8x3xf32, #tpu.memory_space<vmem>>) attributes {dimension_semantics = [#tpu.dimension_semantics<parallel>], iteration_bounds = array<i64: 1>, scalar_prefetch = 0 : i64, scratch_operands = 0 : i64, tpu.core_type = #tpu.core_type<tc>, window_params = [{transform_indices = @transform_0, window_bounds = array<i64: 8, 4>}, {pipeline_mode = #tpu.pipeline_mode<synchronous>, transform_indices = @transform_1, window_bounds = array<i64: 4, 128>}, {pipeline_mode = #tpu.pipeline_mode<synchronous>, transform_indices = @transform_2, window_bounds = array<i64: 1, 128>}, {pipeline_mode = #tpu.pipeline_mode<synchronous>, transform_indices = @transform_3, window_bounds = array<i64: 128, 64>}, {pipeline_mode = #tpu.pipeline_mode<synchronous>, transform_indices = @transform_4, window_bounds = array<i64: 1, 64>}, {pipeline_mode = #tpu.pipeline_mode<synchronous>, transform_indices = @transform_5, window_bounds = array<i64: 64, 3>}, {pipeline_mode = #tpu.pipeline_mode<synchronous>, transform_indices = @transform_6, window_bounds = array<i64: 1, 3>}, {transform_indices = @transform_7, window_bounds = array<i64: 8, 3>}]} {
    %c0 = arith.constant 0 : index
    %c0_0 = arith.constant 0 : index
    %0 = vector.load %arg1[%c0, %c0_0] : memref<8x4xf32, #tpu.memory_space<vmem>>, vector<8x4xf32>
    %c0_1 = arith.constant 0 : index
    %c0_2 = arith.constant 0 : index
    %1 = vector.load %arg2[%c0_1, %c0_2] : memref<4x128xf32, #tpu.memory_space<vmem>>, vector<4x128xf32>
    %2 = vector.extract_strided_slice %0 {offsets = [0, 0], sizes = [8, 1], strides = [1, 1]} : vector<8x4xf32> to vector<8x1xf32>
    %3 = vector.extract_strided_slice %1 {offsets = [0, 0], sizes = [1, 128], strides = [1, 1]} : vector<4x128xf32> to vector<1x128xf32>
    %4 = vector.broadcast %2 : vector<8x1xf32> to vector<8x128xf32>
    %5 = vector.broadcast %3 : vector<1x128xf32> to vector<8x128xf32>
    %6 = arith.mulf %4, %5 : vector<8x128xf32>
    %7 = vector.extract_strided_slice %0 {offsets = [0, 1], sizes = [8, 1], strides = [1, 1]} : vector<8x4xf32> to vector<8x1xf32>
    %8 = vector.extract_strided_slice %1 {offsets = [1, 0], sizes = [1, 128], strides = [1, 1]} : vector<4x128xf32> to vector<1x128xf32>
    %9 = vector.broadcast %7 : vector<8x1xf32> to vector<8x128xf32>
    %10 = vector.broadcast %8 : vector<1x128xf32> to vector<8x128xf32>
    %11 = arith.mulf %9, %10 : vector<8x128xf32>
    %12 = arith.addf %6, %11 : vector<8x128xf32>
    %13 = vector.extract_strided_slice %0 {offsets = [0, 2], sizes = [8, 1], strides = [1, 1]} : vector<8x4xf32> to vector<8x1xf32>
    %14 = vector.extract_strided_slice %1 {offsets = [2, 0], sizes = [1, 128], strides = [1, 1]} : vector<4x128xf32> to vector<1x128xf32>
    %15 = vector.broadcast %13 : vector<8x1xf32> to vector<8x128xf32>
    %16 = vector.broadcast %14 : vector<1x128xf32> to vector<8x128xf32>
    %17 = arith.mulf %15, %16 : vector<8x128xf32>
    %18 = arith.addf %12, %17 : vector<8x128xf32>
    %19 = vector.extract_strided_slice %0 {offsets = [0, 3], sizes = [8, 1], strides = [1, 1]} : vector<8x4xf32> to vector<8x1xf32>
    %20 = vector.extract_strided_slice %1 {offsets = [3, 0], sizes = [1, 128], strides = [1, 1]} : vector<4x128xf32> to vector<1x128xf32>
    %21 = vector.broadcast %19 : vector<8x1xf32> to vector<8x128xf32>
    %22 = vector.broadcast %20 : vector<1x128xf32> to vector<8x128xf32>
    %23 = arith.mulf %21, %22 : vector<8x128xf32>
    %24 = arith.addf %18, %23 : vector<8x128xf32>
    %c0_3 = arith.constant 0 : index
    %c0_4 = arith.constant 0 : index
    %25 = vector.load %arg3[%c0_3, %c0_4] : memref<1x128xf32, #tpu.memory_space<vmem>>, vector<1x128xf32>
    %26 = vector.broadcast %25 : vector<1x128xf32> to vector<8x128xf32>
    %27 = arith.addf %24, %26 : vector<8x128xf32>
    %cst = arith.constant 0.000000e+00 : f32
    %28 = vector.broadcast %cst : f32 to vector<8x128xf32>
    %29 = arith.maximumf %27, %28 : vector<8x128xf32>
    %30 = arith.truncf %29 : vector<8x128xf32> to vector<8x128xbf16>
    %c0_5 = arith.constant 0 : index
    %c0_6 = arith.constant 0 : index
    %31 = vector.load %arg4[%c0_5, %c0_6] : memref<128x64xbf16, #tpu.memory_space<vmem>>, vector<128x64xbf16>
    %cst_7 = arith.constant dense<0.000000e+00> : vector<8x64xf32>
    %32 = tpu.matmul %30, %31, %cst_7 {dimension_numbers = #tpu.dot_dimension_numbers<[1], [0], [0], [1], [0, 0, 1, 1], [], []>} : vector<8x128xbf16>, vector<128x64xbf16>, vector<8x64xf32> -> vector<8x64xf32>
    %c0_8 = arith.constant 0 : index
    %c0_9 = arith.constant 0 : index
    %33 = vector.load %arg5[%c0_8, %c0_9] : memref<1x64xf32, #tpu.memory_space<vmem>>, vector<1x64xf32>
    %34 = vector.broadcast %33 : vector<1x64xf32> to vector<8x64xf32>
    %35 = arith.addf %32, %34 : vector<8x64xf32>
    %cst_10 = arith.constant 0.000000e+00 : f32
    %36 = vector.broadcast %cst_10 : f32 to vector<8x64xf32>
    %37 = arith.maximumf %35, %36 : vector<8x64xf32>
    %38 = arith.truncf %37 : vector<8x64xf32> to vector<8x64xbf16>
    %c0_11 = arith.constant 0 : index
    %c0_12 = arith.constant 0 : index
    %39 = vector.load %arg6[%c0_11, %c0_12] : memref<64x3xbf16, #tpu.memory_space<vmem>>, vector<64x3xbf16>
    %cst_13 = arith.constant dense<0.000000e+00> : vector<8x3xf32>
    %40 = tpu.matmul %38, %39, %cst_13 {dimension_numbers = #tpu.dot_dimension_numbers<[1], [0], [0], [1], [0, 0, 1, 1], [], []>} : vector<8x64xbf16>, vector<64x3xbf16>, vector<8x3xf32> -> vector<8x3xf32>
    %c0_14 = arith.constant 0 : index
    %c0_15 = arith.constant 0 : index
    %41 = vector.load %arg7[%c0_14, %c0_15] : memref<1x3xf32, #tpu.memory_space<vmem>>, vector<1x3xf32>
    %42 = vector.broadcast %41 : vector<1x3xf32> to vector<8x3xf32>
    %43 = arith.addf %40, %42 : vector<8x3xf32>
    %c0_16 = arith.constant 0 : index
    %c0_17 = arith.constant 0 : index
    %44 = vector.load %arg8[%c0_16, %c0_17] : memref<8x3xf32, #tpu.memory_space<vmem>>, vector<8x3xf32>
    tpu.vector_store %arg8[%c0_16, %c0_17], %43 {strides = array<i32>} : memref<8x3xf32, #tpu.memory_space<vmem>>, vector<8x3xf32>,
    return
  }
  func.func @transform_0(%arg0: i32) -> (i32, i32) {
    %c0_i32 = arith.constant 0 : i32
    %c0_i32_0 = arith.constant 0 : i32
    return %arg0, %c0_i32 : i32, i32
  }
  func.func @transform_1(%arg0: i32) -> (i32, i32) {
    %c0_i32 = arith.constant 0 : i32
    %c0_i32_0 = arith.constant 0 : i32
    %c0_i32_1 = arith.constant 0 : i32
    return %c0_i32, %c0_i32_0 : i32, i32
  }
  func.func @transform_2(%arg0: i32) -> (i32, i32) {
    %c0_i32 = arith.constant 0 : i32
    %c0_i32_0 = arith.constant 0 : i32
    %c0_i32_1 = arith.constant 0 : i32
    return %c0_i32, %c0_i32_0 : i32, i32
  }
  func.func @transform_3(%arg0: i32) -> (i32, i32) {
    %c0_i32 = arith.constant 0 : i32
    %c0_i32_0 = arith.constant 0 : i32
    %c0_i32_1 = arith.constant 0 : i32
    return %c0_i32, %c0_i32_0 : i32, i32
  }
  func.func @transform_4(%arg0: i32) -> (i32, i32) {
    %c0_i32 = arith.constant 0 : i32
    %c0_i32_0 = arith.constant 0 : i32
    %c0_i32_1 = arith.constant 0 : i32
    return %c0_i32, %c0_i32_0 : i32, i32
  }
  func.func @transform_5(%arg0: i32) -> (i32, i32) {
    %c0_i32 = arith.constant 0 : i32
    %c0_i32_0 = arith.constant 0 : i32
    %c0_i32_1 = arith.constant 0 : i32
    return %c0_i32, %c0_i32_0 : i32, i32
  }
  func.func @transform_6(%arg0: i32) -> (i32, i32) {
    %c0_i32 = arith.constant 0 : i32
    %c0_i32_0 = arith.constant 0 : i32
    %c0_i32_1 = arith.constant 0 : i32
    return %c0_i32, %c0_i32_0 : i32, i32
  }
  func.func @transform_7(%arg0: i32) -> (i32, i32) {
    %c0_i32 = arith.constant 0 : i32
    %c0_i32_0 = arith.constant 0 : i32
    return %arg0, %c0_i32 : i32, i32
  }
}

</mosaic_0001>

<bundles_post_ra>
// kernel: tpu_custom_call.1
= control target key start
LH: loop header
LB: loop body
LE: loop exit
PB: predicated region body
PF: predicated region fallthrough
CT: control target
= control target key end

     0   :  { %v279_v0 = vmov 0   ;;  %v280_v2 = vmov 2   ;;  %v281_v5 = vmov 1   ;;  %v282_v6 = vmov 3   ;;  %s377_s0 = inlined_call_operand.vmem [shape: f32[8,4], index: 0, kind: input, shape index: {}]   ;;  %s378_s3 = inlined_call_operand.vmem [shape: bf16[128,64], index: 3, kind: input, shape index: {}]   ;;  %s379_s2 = inlined_call_operand.vmem [shape: f32[1,128], index: 2, kind: input, shape index: {}]   ;;  %s380_s4 = inlined_call_operand.vmem [shape: f32[1,64], index: 4, kind: input, shape index: {}]   ;;  %s381_s5 = inlined_call_operand.vmem [shape: bf16[64,3], index: 5, kind: input, shape index: {}]   ;;  %s382_s1 = inlined_call_operand.vmem [shape: f32[4,128], index: 1, kind: input, shape index: {}]   ;;  %s383_s6 = inlined_call_operand.vmem [shape: f32[1,3], index: 6, kind: input, shape index: {}]   ;;  %s384_s7 = inlined_call_operand.vmem [shape: f32[8,3], index: 7, kind: output, shape index: {}]  }
   0x1   :  { %271 = vset.pattern.permute.xlu0 %v279_v0  ;;  %v27_v1 = vld [vmem:[%s377_s0] sm:$0xff]  ;;  %273 = vset.pattern.permute.xlu1 %v280_v2  ;;  %v262_v3 = vld [vmem:[%s378_s3 + $0x38] sm:$0xff]  ;;  %v261_v4 = vld [vmem:[%s378_s3 + $0x30] sm:$0xff]  ;;  %vm183_vm0 = vcmask 523264   ;;  %vm200_vm1 = vcmask 23552  }
   0x2   :  { %31 = vperm.xlu0 %271, %v27_v1   ;;  %44 = vperm.xlu1 %273, %v27_v1   ;;  %v260_v7 = vld [vmem:[%s378_s3 + $0x28] sm:$0xff]  ;;  %v259_v8 = vld [vmem:[%s378_s3 + $0x20] sm:$0xff]  ;;  %v258_v9 = vld [vmem:[%s378_s3 + $0x18] sm:$0xff] }
   0x3   :  { %132 = vmatpush.bf16.msra.mxu0 %v262_v3  ;;  %v257_v10 = vld [vmem:[%s378_s3 + $0x10] sm:$0xff]  ;;  %v256_v11 = vld [vmem:[%s378_s3 + $0x8] sm:$0xff]  ;;  %v255_v12 = vld [vmem:[%s378_s3] sm:$0xff] }
   0x4   :  { %v266_v13 = vld [vmem:[%s381_s5 + $0x18] sm:$0xff]  ;;  %v265_v14 = vld [vmem:[%s381_s5 + $0x10] sm:$0xff]  ;;  %v28_v17 = vld [vmem:[%s382_s1] sm:$0xf] }
   0x5   :  { %191 = vmatpush.bf16.msra.mxu1 %v266_v13  ;;  %v34_v18 = vperm.slane %v28_v17, 0  ;;  %v40_v19 = vperm.slane %v28_v17, 1  ;;  %v47_v20 = vperm.slane %v28_v17, 2  ;;  %v54_v21 = vperm.slane %v28_v17, 3  ;;  %v276_v30 = vld [vmem:[%s379_s2] ss:$0 sm:$0xff] }
   0x6   :  { %v264_v35 = vld [vmem:[%s381_s5 + $0x8] sm:$0xff]  ;;  %v263_v36 = vld [vmem:[%s381_s5] sm:$0xff] }
   0x7   :  { %133 = vmatpush.bf16.msra.mxu0 %v261_v4  ;;  %v277_v37 = vld [vmem:[%s380_s4] ss:$0 sm:$0xff] }
   0x8   :  { %v278_v43 = vld [vmem:[%s383_s6] ss:$0 sm:$0xff] }
   0x9   :  { %192 = vmatpush.bf16.msra.mxu1 %v265_v14 }
   0xa   :  { %272 = vset.pattern.permute.xlu0 %v281_v5  ;;  %274 = vset.pattern.permute.xlu1 %v282_v6 }
   0xb   :  { %37 = vperm.xlu0 %272, %v27_v1   ;;  %51 = vperm.xlu1 %274, %v27_v1  }
   0xc   :  { %134 = vmatpush.bf16.msra.mxu0 %v260_v7 }
   0xd   :  { %193 = vmatpush.bf16.msra.mxu1 %v264_v35 }
  0x10   :  { %135 = vmatpush.bf16.msra.mxu0 %v259_v8 }
  0x11   :  { %194 = vmatpush.bf16.msra.mxu1 %v263_v36 }
  0x13   :  { %275 = vset.pattern.permute.xlu0 %v282_v6 }
  0x14   :  { %136 = vmatpush.bf16.msra.mxu0 %v258_v9 }
  0x18   :  { %137 = vmatpush.bf16.msra.mxu0 %v257_v10 }
  0x1c   :  { %138 = vmatpush.bf16.msra.mxu0 %v256_v11 }
  0x20   :  { %139 = vmatpush.bf16.msra.mxu0 %v255_v12 }
  0x74   :  { %v32_v15 = vpop.permute.xlu0 %31  ;;  %v45_v16 = vpop.permute.xlu1 %44 }
  0x75   :  { %v35_v24 = vmul.f32 %v34_v18, %v32_v15  ;;  %v48_v26 = vmul.f32 %v47_v20, %v45_v16 }
  0x7d   :  { %v38_v22 = vpop.permute.xlu0 %37  ;;  %v52_v23 = vpop.permute.xlu1 %51 }
  0x7e   :  { %v41_v25 = vmul.f32 %v40_v19, %v38_v22  ;;  %v55_v28 = vmul.f32 %v54_v21, %v52_v23 }
  0x80   :  { %v42_v27 = vadd.f32 %v41_v25, %v35_v24 }
  0x82   :  { %v49_v29 = vadd.f32 %v48_v26, %v42_v27 }
  0x84   :  { %v56_v31 = vadd.f32 %v55_v28, %v49_v29 }
  0x86   :  { %v61_v32 = vadd.f32 %v276_v30, %v56_v31 }
  0x88   :  { %v62_v33 = vmax.f32 %v61_v32, 0.0 }
  0x8a   :  { %v63_v34 = vpack.c.bf16 %v62_v33, %v62_v33 }
  0x8c   :  { %140 = vmatmul.bf16.vlgmr.msra.gmra.mxu0 %v63_v34 }
 0x109   :  { %v141_v38 = vpop.f32.mrf.mxu0 }
 0x10a   :  { %v142_v39 = vadd.f32 %v277_v37, %v141_v38 }
 0x10c   :  { %v145_v40 = vmax.f32 %v142_v39, 0.0 }
 0x10e   :  { %v146_v41 = vpack.c.bf16 %v145_v40, %v145_v40 }
 0x110   :  { %254 = vmatmul.msk.bf16.vlgmr.msra.gmra.mxu1 %vm183_vm0, %v146_v41 }
 0x111   :  { %v143_v42 = vpop.f32.mrf.mxu0 }
 0x18d   :  { %v196_v44 = vpop.f32.mrf.mxu1 }
 0x18e   :  { %v197_v45 = vadd.f32 %v278_v43, %v196_v44 }
 0x190   :  { %201 = vst.msk [vmem:[%s384_s7] sm:$0xff] %vm200_vm1, %v197_v45 }
 0x195   :  { %v198_v46 = vpop.f32.mrf.mxu1 }

</bundles_post_ra>
